<compile_context>
chip_gen: v5e
topology: v5e:2x2
jax: 0.10.0
libtpu: 0.0.40
codegen_flags: <defaults>
</compile_context>

<pallas_src>
import functools

import jax
import jax.numpy as jnp
from jax.experimental import pallas as pl
from jax.experimental.pallas import tpu as pltpu

NEG_SLOPE = 0.2


def _leaky_relu(x):
    return jnp.where(x > 0, x, NEG_SLOPE * x)


def _band_matrices(w_oihw, W_img):
    """PyTorch conv weight (Cout, Cin, 3, 3) -> 3 banded GEMM matrices.

    Returns m with shape (3, W*Cin, W*Cout) such that, with input lane index
    (wx*Cin + ci) and output lane index (wo*Cout + co),

        m[dy, wx*Cin + ci, wo*Cout + co] = w[co, ci, dy, wx - wo + 1]   if 0 <= wx-wo+1 <= 2
                                         = 0                           otherwise

    i.e. the dx taps, the channel contraction and the W-direction 'same' zero padding of a
    3x3 conv are all folded into one matmul per kernel row dy.
    """
    Cout, Cin, KH, KW = w_oihw.shape
    wt = jnp.transpose(w_oihw, (2, 3, 1, 0)).astype(jnp.float32)      # (KH, KW, Cin, Cout)
    wx = jnp.arange(W_img)[:, None]                                   # source column
    wo = jnp.arange(W_img)[None, :]                                   # output column
    dx = wx - wo + 1                                                  # (W, W)
    valid = ((dx >= 0) & (dx < KW)).astype(jnp.float32)
    dx_c = jnp.clip(dx, 0, KW - 1)
    m = wt[:, dx_c] * valid[None, :, :, None, None]                   # (KH, W, W, Cin, Cout)
    m = jnp.transpose(m, (0, 1, 3, 2, 4))                             # (KH, W_src, Cin, W_dst, Cout)
    return m.reshape(KH, W_img * Cin, W_img * Cout)


def double_conv_kernel(x_ref, m1_ref, b1_ref, m2_ref, b2_ref, o_ref, *, H):
    # x_ref : (1, H, W*Cin)        lane-dense input tile (one batch element, NHWC flattened)
    # m1_ref: (3, W*Cin,  W*Cout)  banded GEMM matrices for conv1 (one per kernel row dy)
    # b1_ref: (1, W*Cout)          conv1 bias, tiled over W
    # m2_ref: (3, W*Cout, W*Cout)  banded GEMM matrices for conv2
    # b2_ref: (1, W*Cout)          conv2 bias, tiled over W
    # o_ref : (1, H, W*Cout)       lane-dense output tile
    x = x_ref[0].astype(jnp.float32)                                  # (H, W*Cin)
    row = jax.lax.broadcasted_iota(jnp.int32, (H, 1), 0)

    def shift_down(a):
        # a_down[h] = a[h-1], zero row at h == 0   (kernel row dy = 0)
        return jnp.where(row == 0, 0.0, pltpu.roll(a, shift=1, axis=0))

    def shift_up(a):
        # a_up[h] = a[h+1], zero row at h == H-1   (kernel row dy = 2)
        return jnp.where(row == H - 1, 0.0, pltpu.roll(a, shift=H - 1, axis=0))

    def conv3x3(a, m_ref, b_ref):
        acc = jnp.dot(shift_down(a), m_ref[0], preferred_element_type=jnp.float32)
        acc = acc + jnp.dot(a, m_ref[1], preferred_element_type=jnp.float32)
        acc = acc + jnp.dot(shift_up(a), m_ref[2], preferred_element_type=jnp.float32)
        return acc + b_ref[...]

    y1 = _leaky_relu(conv3x3(x, m1_ref, b1_ref))                      # (H, W*Cout)
    y2 = _leaky_relu(conv3x3(y1, m2_ref, b2_ref))                     # (H, W*Cout)
    o_ref[0] = y2.astype(o_ref.dtype)


def double_conv(x_nchw, w1, b1, w2, b2):
    """x_nchw: (N, Cin, H, W) float32.  Returns (N, Cout, H, W) float32."""
    N, Cin, H, W = x_nchw.shape
    Cout = w1.shape[0]

    # NCHW -> NHWC flattened over the lane axis: (N, H, W*Cin).  No spatial padding needed:
    # W-padding is folded into the banded matrices, H-padding into the in-kernel roll masks.
    x_lane = jnp.transpose(x_nchw, (0, 2, 3, 1)).reshape(N, H, W * Cin).astype(jnp.float32)

    m1 = _band_matrices(w1, W)                                        # (3, W*Cin,  W*Cout)
    m2 = _band_matrices(w2, W)                                        # (3, W*Cout, W*Cout)
    b1_lane = jnp.tile(b1.astype(jnp.float32), W).reshape(1, W * Cout)
    b2_lane = jnp.tile(b2.astype(jnp.float32), W).reshape(1, W * Cout)

    kernel = functools.partial(double_conv_kernel, H=H)

    flops = (2 * N * 3 * H * (W * Cin) * (W * Cout)
             + 2 * N * 3 * H * (W * Cout) * (W * Cout))
    bytes_accessed = 4 * (x_lane.size + m1.size + m2.size
                          + b1_lane.size + b2_lane.size + N * H * W * Cout)

    out_lane = pl.pallas_call(
        kernel,
        out_shape=jax.ShapeDtypeStruct((N, H, W * Cout), jnp.float32),
        grid_spec=pltpu.PrefetchScalarGridSpec(
            num_scalar_prefetch=0,
            grid=(N,),
            in_specs=[
                pl.BlockSpec((1, H, W * Cin), lambda n: (n, 0, 0)),
                pl.BlockSpec((3, W * Cin, W * Cout), lambda n: (0, 0, 0)),
                pl.BlockSpec((1, W * Cout), lambda n: (0, 0)),
                pl.BlockSpec((3, W * Cout, W * Cout), lambda n: (0, 0, 0)),
                pl.BlockSpec((1, W * Cout), lambda n: (0, 0)),
            ],
            out_specs=pl.BlockSpec((1, H, W * Cout), lambda n: (n, 0, 0)),
        ),
        compiler_params=pltpu.CompilerParams(
            dimension_semantics=("parallel",)),
        cost_estimate=pl.CostEstimate(
            flops=int(flops), transcendentals=0,
            bytes_accessed=int(bytes_accessed)),
    )(x_lane, m1, b1_lane, m2, b2_lane)

    # (N, H, W*Cout) -> (N, H, W, Cout) -> NCHW
    return jnp.transpose(out_lane.reshape(N, H, W, Cout), (0, 3, 1, 2))


def _reference(x_nchw, w1, b1, w2, b2):
    """Pure-JAX reference using lax.conv (NCHW, same semantics as PyTorch)."""
    def conv(x, w, b):
        y = jax.lax.conv_general_dilated(
            x, w, window_strides=(1, 1), padding=((1, 1), (1, 1)),
            dimension_numbers=("NCHW", "OIHW", "NCHW"))
        return y + b.reshape(1, -1, 1, 1)

    def lrelu(x):
        return jnp.where(x > 0, x, NEG_SLOPE * x)

    return lrelu(conv(lrelu(conv(x_nchw, w1, b1)), w2, b2))


if __name__ == "__main__":
    key = jax.random.PRNGKey(0)
    N, Cin, Cout, H, W = 2, 4, 8, 16, 16

    k_x, k_w1, k_b1, k_w2, k_b2 = jax.random.split(key, 5)
    x = jax.random.normal(k_x, (N, Cin, H, W), dtype=jnp.float32)

    # Deterministic synthetic parameters (PyTorch-default-like uniform scale).
    fan1 = Cin * 9
    fan2 = Cout * 9
    w1 = jax.random.uniform(k_w1, (Cout, Cin, 3, 3), jnp.float32,
                            -1.0 / jnp.sqrt(fan1), 1.0 / jnp.sqrt(fan1))
    b1 = jax.random.uniform(k_b1, (Cout,), jnp.float32,
                            -1.0 / jnp.sqrt(fan1), 1.0 / jnp.sqrt(fan1))
    w2 = jax.random.uniform(k_w2, (Cout, Cout, 3, 3), jnp.float32,
                            -1.0 / jnp.sqrt(fan2), 1.0 / jnp.sqrt(fan2))
    b2 = jax.random.uniform(k_b2, (Cout,), jnp.float32,
                            -1.0 / jnp.sqrt(fan2), 1.0 / jnp.sqrt(fan2))

    out = jax.block_until_ready(double_conv(x, w1, b1, w2, b2))
    ref = jax.block_until_ready(_reference(x, w1, b1, w2, b2))

    assert out.shape == (N, Cout, H, W), out.shape
    assert jnp.allclose(out, ref, atol=1e-4, rtol=1e-4), float(
        jnp.max(jnp.abs(out - ref)))

    print("KERNEL_OK")
</pallas_src>

<mosaic_0001>
module attributes {stable_mosaic.version = 11 : i64} {
  func.func @double_conv_kernel(%arg0: i32, %arg1: memref<1x16x64xf32, #tpu.memory_space<vmem>>, %arg2: memref<3x64x128xf32, #tpu.memory_space<vmem>>, %arg3: memref<1x128xf32, #tpu.memory_space<vmem>>, %arg4: memref<3x128x128xf32, #tpu.memory_space<vmem>>, %arg5: memref<1x128xf32, #tpu.memory_space<vmem>>, %arg6: memref<1x16x128xf32, #tpu.memory_space<vmem>>) attributes {dimension_semantics = [#tpu.dimension_semantics<parallel>], iteration_bounds = array<i64: 2>, scalar_prefetch = 0 : i64, scratch_operands = 0 : i64, tpu.core_type = #tpu.core_type<tc>, window_params = [{transform_indices = @transform_0, window_bounds = array<i64: 1, 16, 64>}, {pipeline_mode = #tpu.pipeline_mode<synchronous>, transform_indices = @transform_1, window_bounds = array<i64: 3, 64, 128>}, {pipeline_mode = #tpu.pipeline_mode<synchronous>, transform_indices = @transform_2, window_bounds = array<i64: 1, 128>}, {pipeline_mode = #tpu.pipeline_mode<synchronous>, transform_indices = @transform_3, window_bounds = array<i64: 3, 128, 128>}, {pipeline_mode = #tpu.pipeline_mode<synchronous>, transform_indices = @transform_4, window_bounds = array<i64: 1, 128>}, {transform_indices = @transform_5, window_bounds = array<i64: 1, 16, 128>}]} {
    %c0 = arith.constant 0 : index
    %c0_0 = arith.constant 0 : index
    %c0_1 = arith.constant 0 : index
    %0 = vector.load %arg1[%c0, %c0_0, %c0_1] : memref<1x16x64xf32, #tpu.memory_space<vmem>>, vector<1x16x64xf32>
    %1 = vector.shape_cast %0 : vector<1x16x64xf32> to vector<16x64xf32>
    %2 = tpu.iota {dimensions = array<i32: 0>} : vector<16x1xi32>
    %c0_i32 = arith.constant 0 : i32
    %3 = vector.broadcast %c0_i32 : i32 to vector<16x1xi32>
    %4 = arith.cmpi eq, %2, %3 : vector<16x1xi32>
    %c1_i32 = arith.constant 1 : i32
    %5 = tpu.dynamic_rotate %1 by %c1_i32 dim 0 : vector<16x64xf32>, i32 -> vector<16x64xf32>
    %cst = arith.constant 0.000000e+00 : f32
    %6 = vector.shape_cast %4 : vector<16x1xi1> to vector<16x1xi1>
    %7 = vector.broadcast %6 : vector<16x1xi1> to vector<16x64xi1>
    %8 = vector.broadcast %cst : f32 to vector<16x64xf32>
    %9 = arith.select %7, %8, %5 : vector<16x64xi1>, vector<16x64xf32>
    %c0_2 = arith.constant 0 : index
    %c0_3 = arith.constant 0 : index
    %c0_4 = arith.constant 0 : index
    %10 = vector.load %arg2[%c0_2, %c0_3, %c0_4] : memref<3x64x128xf32, #tpu.memory_space<vmem>>, vector<1x64x128xf32>
    %11 = vector.shape_cast %10 : vector<1x64x128xf32> to vector<64x128xf32>
    %cst_5 = arith.constant dense<0.000000e+00> : vector<16x128xf32>
    %12 = tpu.matmul %9, %11, %cst_5 {dimension_numbers = #tpu.dot_dimension_numbers<[1], [0], [0], [1], [0, 0, 1, 1], [], []>} : vector<16x64xf32>, vector<64x128xf32>, vector<16x128xf32> -> vector<16x128xf32>
    %c1 = arith.constant 1 : index
    %c0_6 = arith.constant 0 : index
    %c0_7 = arith.constant 0 : index
    %13 = vector.load %arg2[%c1, %c0_6, %c0_7] : memref<3x64x128xf32, #tpu.memory_space<vmem>>, vector<1x64x128xf32>
    %14 = vector.shape_cast %13 : vector<1x64x128xf32> to vector<64x128xf32>
    %cst_8 = arith.constant dense<0.000000e+00> : vector<16x128xf32>
    %15 = tpu.matmul %1, %14, %cst_8 {dimension_numbers = #tpu.dot_dimension_numbers<[1], [0], [0], [1], [0, 0, 1, 1], [], []>} : vector<16x64xf32>, vector<64x128xf32>, vector<16x128xf32> -> vector<16x128xf32>
    %16 = arith.addf %12, %15 : vector<16x128xf32>
    %c15_i32 = arith.constant 15 : i32
    %17 = vector.broadcast %c15_i32 : i32 to vector<16x1xi32>
    %18 = arith.cmpi eq, %2, %17 : vector<16x1xi32>
    %c15_i32_9 = arith.constant 15 : i32
    %19 = tpu.dynamic_rotate %1 by %c15_i32_9 dim 0 : vector<16x64xf32>, i32 -> vector<16x64xf32>
    %cst_10 = arith.constant 0.000000e+00 : f32
    %20 = vector.shape_cast %18 : vector<16x1xi1> to vector<16x1xi1>
    %21 = vector.broadcast %20 : vector<16x1xi1> to vector<16x64xi1>
    %22 = vector.broadcast %cst_10 : f32 to vector<16x64xf32>
    %23 = arith.select %21, %22, %19 : vector<16x64xi1>, vector<16x64xf32>
    %c2 = arith.constant 2 : index
    %c0_11 = arith.constant 0 : index
    %c0_12 = arith.constant 0 : index
    %24 = vector.load %arg2[%c2, %c0_11, %c0_12] : memref<3x64x128xf32, #tpu.memory_space<vmem>>, vector<1x64x128xf32>
    %25 = vector.shape_cast %24 : vector<1x64x128xf32> to vector<64x128xf32>
    %cst_13 = arith.constant dense<0.000000e+00> : vector<16x128xf32>
    %26 = tpu.matmul %23, %25, %cst_13 {dimension_numbers = #tpu.dot_dimension_numbers<[1], [0], [0], [1], [0, 0, 1, 1], [], []>} : vector<16x64xf32>, vector<64x128xf32>, vector<16x128xf32> -> vector<16x128xf32>
    %27 = arith.addf %16, %26 : vector<16x128xf32>
    %c0_14 = arith.constant 0 : index
    %c0_15 = arith.constant 0 : index
    %28 = vector.load %arg3[%c0_14, %c0_15] : memref<1x128xf32, #tpu.memory_space<vmem>>, vector<1x128xf32>
    %29 = vector.broadcast %28 : vector<1x128xf32> to vector<16x128xf32>
    %30 = arith.addf %27, %29 : vector<16x128xf32>
    %cst_16 = arith.constant 0.000000e+00 : f32
    %31 = vector.broadcast %cst_16 : f32 to vector<16x128xf32>
    %32 = arith.cmpf ogt, %30, %31 : vector<16x128xf32>
    %cst_17 = arith.constant 2.000000e-01 : f32
    %33 = vector.broadcast %cst_17 : f32 to vector<16x128xf32>
    %34 = arith.mulf %33, %30 : vector<16x128xf32>
    %35 = arith.select %32, %30, %34 : vector<16x128xi1>, vector<16x128xf32>
    %c0_i32_18 = arith.constant 0 : i32
    %36 = vector.broadcast %c0_i32_18 : i32 to vector<16x1xi32>
    %37 = arith.cmpi eq, %2, %36 : vector<16x1xi32>
    %c1_i32_19 = arith.constant 1 : i32
    %38 = tpu.dynamic_rotate %35 by %c1_i32_19 dim 0 : vector<16x128xf32>, i32 -> vector<16x128xf32>
    %cst_20 = arith.constant 0.000000e+00 : f32
    %39 = vector.shape_cast %37 : vector<16x1xi1> to vector<16x1xi1>
    %40 = vector.broadcast %39 : vector<16x1xi1> to vector<16x128xi1>
    %41 = vector.broadcast %cst_20 : f32 to vector<16x128xf32>
    %42 = arith.select %40, %41, %38 : vector<16x128xi1>, vector<16x128xf32>
    %c0_21 = arith.constant 0 : index
    %c0_22 = arith.constant 0 : index
    %c0_23 = arith.constant 0 : index
    %43 = vector.load %arg4[%c0_21, %c0_22, %c0_23] : memref<3x128x128xf32, #tpu.memory_space<vmem>>, vector<1x128x128xf32>
    %44 = vector.shape_cast %43 : vector<1x128x128xf32> to vector<128x128xf32>
    %cst_24 = arith.constant dense<0.000000e+00> : vector<16x128xf32>
    %45 = tpu.matmul %42, %44, %cst_24 {dimension_numbers = #tpu.dot_dimension_numbers<[1], [0], [0], [1], [0, 0, 1, 1], [], []>} : vector<16x128xf32>, vector<128x128xf32>, vector<16x128xf32> -> vector<16x128xf32>
    %c1_25 = arith.constant 1 : index
    %c0_26 = arith.constant 0 : index
    %c0_27 = arith.constant 0 : index
    %46 = vector.load %arg4[%c1_25, %c0_26, %c0_27] : memref<3x128x128xf32, #tpu.memory_space<vmem>>, vector<1x128x128xf32>
    %47 = vector.shape_cast %46 : vector<1x128x128xf32> to vector<128x128xf32>
    %cst_28 = arith.constant dense<0.000000e+00> : vector<16x128xf32>
    %48 = tpu.matmul %35, %47, %cst_28 {dimension_numbers = #tpu.dot_dimension_numbers<[1], [0], [0], [1], [0, 0, 1, 1], [], []>} : vector<16x128xf32>, vector<128x128xf32>, vector<16x128xf32> -> vector<16x128xf32>
    %49 = arith.addf %45, %48 : vector<16x128xf32>
    %c15_i32_29 = arith.constant 15 : i32
    %50 = vector.broadcast %c15_i32_29 : i32 to vector<16x1xi32>
    %51 = arith.cmpi eq, %2, %50 : vector<16x1xi32>
    %c15_i32_30 = arith.constant 15 : i32
    %52 = tpu.dynamic_rotate %35 by %c15_i32_30 dim 0 : vector<16x128xf32>, i32 -> vector<16x128xf32>
    %cst_31 = arith.constant 0.000000e+00 : f32
    %53 = vector.shape_cast %51 : vector<16x1xi1> to vector<16x1xi1>
    %54 = vector.broadcast %53 : vector<16x1xi1> to vector<16x128xi1>
    %55 = vector.broadcast %cst_31 : f32 to vector<16x128xf32>
    %56 = arith.select %54, %55, %52 : vector<16x128xi1>, vector<16x128xf32>
    %c2_32 = arith.constant 2 : index
    %c0_33 = arith.constant 0 : index
    %c0_34 = arith.constant 0 : index
    %57 = vector.load %arg4[%c2_32, %c0_33, %c0_34] : memref<3x128x128xf32, #tpu.memory_space<vmem>>, vector<1x128x128xf32>
    %58 = vector.shape_cast %57 : vector<1x128x128xf32> to vector<128x128xf32>
    %cst_35 = arith.constant dense<0.000000e+00> : vector<16x128xf32>
    %59 = tpu.matmul %56, %58, %cst_35 {dimension_numbers = #tpu.dot_dimension_numbers<[1], [0], [0], [1], [0, 0, 1, 1], [], []>} : vector<16x128xf32>, vector<128x128xf32>, vector<16x128xf32> -> vector<16x128xf32>
    %60 = arith.addf %49, %59 : vector<16x128xf32>
    %c0_36 = arith.constant 0 : index
    %c0_37 = arith.constant 0 : index
    %61 = vector.load %arg5[%c0_36, %c0_37] : memref<1x128xf32, #tpu.memory_space<vmem>>, vector<1x128xf32>
    %62 = vector.broadcast %61 : vector<1x128xf32> to vector<16x128xf32>
    %63 = arith.addf %60, %62 : vector<16x128xf32>
    %cst_38 = arith.constant 0.000000e+00 : f32
    %64 = vector.broadcast %cst_38 : f32 to vector<16x128xf32>
    %65 = arith.cmpf ogt, %63, %64 : vector<16x128xf32>
    %cst_39 = arith.constant 2.000000e-01 : f32
    %66 = vector.broadcast %cst_39 : f32 to vector<16x128xf32>
    %67 = arith.mulf %66, %63 : vector<16x128xf32>
    %68 = arith.select %65, %63, %67 : vector<16x128xi1>, vector<16x128xf32>
    %c0_40 = arith.constant 0 : index
    %c0_41 = arith.constant 0 : index
    %c0_42 = arith.constant 0 : index
    %69 = vector.load %arg6[%c0_40, %c0_41, %c0_42] : memref<1x16x128xf32, #tpu.memory_space<vmem>>, vector<1x16x128xf32>
    %70 = vector.shape_cast %69 : vector<1x16x128xf32> to vector<16x128xf32>
    %71 = vector.shape_cast %68 : vector<16x128xf32> to vector<1x16x128xf32>
    tpu.vector_store %arg6[%c0_40, %c0_41, %c0_42], %71 {strides = array<i32>} : memref<1x16x128xf32, #tpu.memory_space<vmem>>, vector<1x16x128xf32>,
    return
  }
  func.func @transform_0(%arg0: i32) -> (i32, i32, i32) {
    %c0_i32 = arith.constant 0 : i32
    %c0_i32_0 = arith.constant 0 : i32
    %c0_i32_1 = arith.constant 0 : i32
    return %arg0, %c0_i32, %c0_i32_0 : i32, i32, i32
  }
  func.func @transform_1(%arg0: i32) -> (i32, i32, i32) {
    %c0_i32 = arith.constant 0 : i32
    %c0_i32_0 = arith.constant 0 : i32
    %c0_i32_1 = arith.constant 0 : i32
    %c0_i32_2 = arith.constant 0 : i32
    return %c0_i32, %c0_i32_0, %c0_i32_1 : i32, i32, i32
  }
  func.func @transform_2(%arg0: i32) -> (i32, i32) {
    %c0_i32 = arith.constant 0 : i32
    %c0_i32_0 = arith.constant 0 : i32
    %c0_i32_1 = arith.constant 0 : i32
    return %c0_i32, %c0_i32_0 : i32, i32
  }
  func.func @transform_3(%arg0: i32) -> (i32, i32, i32) {
    %c0_i32 = arith.constant 0 : i32
    %c0_i32_0 = arith.constant 0 : i32
    %c0_i32_1 = arith.constant 0 : i32
    %c0_i32_2 = arith.constant 0 : i32
    return %c0_i32, %c0_i32_0, %c0_i32_1 : i32, i32, i32
  }
  func.func @transform_4(%arg0: i32) -> (i32, i32) {
    %c0_i32 = arith.constant 0 : i32
    %c0_i32_0 = arith.constant 0 : i32
    %c0_i32_1 = arith.constant 0 : i32
    return %c0_i32, %c0_i32_0 : i32, i32
  }
  func.func @transform_5(%arg0: i32) -> (i32, i32, i32) {
    %c0_i32 = arith.constant 0 : i32
    %c0_i32_0 = arith.constant 0 : i32
    %c0_i32_1 = arith.constant 0 : i32
    return %arg0, %c0_i32, %c0_i32_0 : i32, i32, i32
  }
}

</mosaic_0001>

<bundles_post_ra>
// kernel: tpu_custom_call.1
= control target key start
LH: loop header
LB: loop body
LE: loop exit
PB: predicated region body
PF: predicated region fallthrough
CT: control target
= control target key end

     0   :  { %10 = vsyncpa [#allocation3], 0  ;;  %s1202_s0 = inlined_call_operand.hbm [shape: f32[2,16,64], index: 0, kind: input, shape index: {}]   ;;  %s1203_s1 = inlined_call_operand.hbm [shape: f32[3,64,128], index: 1, kind: input, shape index: {}]   ;;  %s1204_s2 = inlined_call_operand.vmem [shape: f32[1,128], index: 2, kind: input, shape index: {}]   ;;  %s1205_s3 = inlined_call_operand.hbm [shape: f32[3,128,128], index: 3, kind: input, shape index: {}]   ;;  %s1206_s4 = inlined_call_operand.vmem [shape: f32[1,128], index: 4, kind: input, shape index: {}]   ;;  %s1207_s5 = inlined_call_operand.hbm [shape: f32[2,16,128], index: 5, kind: output, shape index: {}]  }
   0x1   :  { %12 = vsyncpa [#allocation3 + $0x1], 0 }
   0x2   :  { %13 = vsyncpa [#allocation6], 0 }
   0x3   :  { %14 = vsyncpa [#allocation4], 0 }
   0x4   :  { %16 = vsyncpa [#allocation4 + $0x1], 0  ;;  %s993_s18 = smov 0   ;;  %s995_s19 = smov 0  }
   0x5   :  { %s997_s20 = smov 0   ;;  %s999_s21 = smov 0  }
   0x6 LB: > { %s1014_s22 = sadd.s32 4294967295, %s955_s21   ;;  %s692_s23 = sadd.s32 4294967294, %s955_s21   ;;  %s955_s21 = sphi %s999_s21, %s1219_s21   ;;  %s951_s20 = sphi %s997_s20, %s1218_s20   ;;  %s947_s19 = sphi %s995_s19, %s1217_s19   ;;  %s943_s18 = sphi %s993_s18, %s1216_s18  }
   0x7   : > { %p42_p0 = scmp.ne.s32.totalorder %s947_s19, %s943_s18  ;;  %p43_p1 = scmp.eq.s32.totalorder %s1014_s22, 0 }
   0x8   : > { %p150_p2 = scmp.eq.s32.totalorder %s1014_s22, 1  ;;  %p156_p3 = scmp.eq.s32.totalorder %s692_s23, 1 }
   0x9   : > { %p1023_p4 = por %p43_p1, %p42_p0  ;;  %p693_p5 = scmp.ge.s32.totalorder %s955_s21, 1 }
   0xa   : > { %p1028_p6 = por %p156_p3, %p42_p0  ;;  %p163_p7 = scmp.lt.s32.totalorder %s955_s21, 3 }
   0xb   : > { %s174_s28 = sshll.u32 %s1203_s1, 4  ;;  %s957_s30 = smov [#allocation5]   ;;  %s175_s28 = int_to_ptr.hbm [resolvable:$true] %s174_s28 }
   0xc   : > { %p1036_p8 = pnand %p693_p5, %p163_p7  ;;  %s176_s6 = sshll.u32 %s957_s30, 4  ;;  %s177_s6 = int_to_ptr.vmem [resolvable:$true] %s176_s6 }
   0xd   : > { %s191_s9 = sshll.u32 %s1205_s3, 4  ;;  %s1208_s10 = smov 128   ;;  %s192_s9 = int_to_ptr.hbm [resolvable:$true] %s191_s9 }
   0xe   : > { %p734_p9 = pneg %p1036_p8  ;;  %s959_s11 = smov 8  }
   0xf   : > { %s960_s12 = smov [#allocation7]   ;;  %s1055_s14 = sadd.s32 1, %s955_s21  }
  0x10   : > { %p735_p10 = pnand %p734_p9, %p43_p1  ;;  %s193_s13 = sshll.u32 %s960_s12, 4  ;;  %s194_s13 = int_to_ptr.vmem [resolvable:$true] %s193_s13 }
  0x11   : > { %s29_s15 = sadd.s32 1, %s951_s20  ;;  %s26_s16 = ssub.s32 %s955_s21, %s1055_s14 }
  0x12   : > { %737 = dma.hbm_to_vmem [thread:$0]  (!%p735_p10), %s175_s28, 3072, %s177_s6, [#allocation6], %s1208_s10, %s1208_s10, %s959_s11  }
  0x13   : > { %740 = dma.hbm_to_vmem [thread:$0]  (!%p735_p10), %s192_s9, 6144, %s194_s13, [#allocation6], %s1208_s10, %s1208_s10, %s959_s11  }
  0x14   : > { %p36_p12 = scmp.ne.s32.totalorder %s951_s20, %s947_s19  ;;  %p27_p13 = scmp.eq.s32.totalorder %s26_s16, 0 }
  0x15   : > { %p37_p0 = scmp.eq.s32.totalorder %s955_s21, 0  ;;  %p751_p5 = scmp.lt.s32.totalorder %s955_s21, 2 }
  0x16   : > { %p1065_p3 = por %p150_p2, %p36_p12  ;;  %s210_s26 = sand.u32 1, %s951_s20  }
  0x17   : > { %s1071_s23 = scalar_select %p27_p13, %s951_s20, %s29_s15  }
  0x18   : > { %p38_p7 = por %p37_p0, %p36_p12  ;;  %s697_s27 = sshll.u32 %s210_s26, 4 }
  0x19   : > { %s720_s28 = sshll.u32 %s955_s21, 4  ;;  %s214_s8 = scalar_lea.vmem [#allocation2], %s697_s27 }
  0x1a   : > { %s219_s7 = scalar_lea.hbm %s1202_s0, %s720_s28  ;;  %s222_s9 = sshll.u32 %s214_s8, 4  ;;  %s223_s9 = int_to_ptr.vmem [resolvable:$true] %s222_s9 }
  0x1b   : > { %s220_s12 = sshll.u32 %s219_s7, 4  ;;  %p1078_p2 = pnand %p751_p5, %p38_p7  ;;  %s221_s12 = int_to_ptr.hbm [resolvable:$true] %s220_s12 }
  0x1c   : > { %s211_s15 = scalar_lea.sflag [#allocation3], %s210_s26  ;;  %s855_s16 = sshra.s32 %s221_s12, 4  ;;  %s856_s16 = int_to_ptr.hbm [resolvable:$true] %s855_s16 }
  0x1d   : > { %s857_s10 = scalar_lea.hbm %s856_s16, 16  ;;  %p859_p10 = pneg %p1078_p2 }
  0x1e   : > { %p858_p9 = scmp.ne.s32.totalorder %s856_s16, %s857_s10  ;;  %s862_s30 = scalar_lea.hbm %s1202_s0, 32 }
  0x1f   : > { %p863_p0 = scmp.lt.s32.totalorder %s856_s16, %s1202_s0  ;;  %p864_p5 = scmp.lt.s32.totalorder %s862_s30, %s857_s10 }
  0x20   : > { %p860_p12 = pnand %p859_p10, %p858_p9 }
  0x21   : > { %p865_p7 = por %p864_p5, %p863_p0 }
  0x22   : > { %p861_p13 = pneg %p860_p12 }
  0x24   : > { %p866_p11 = pnand %p865_p7, %p861_p13 }
  0x26   : > { %869 = shalt.err (!%p866_p11)
}
  0x27   : > { %s1214_s26 = smov 128   ;;  %234 = sbr.rel (%p1036_p8) target bundleno = 376 (0x178), region = 40 }
  0x28   : > { %744 = dma.hbm_to_vmem [thread:$0]  (!%p1078_p2), %s221_s12, 256, %s223_s9, %s211_s15, %s1214_s26, %s1214_s26, %s959_s11  }
  0x29   : > { %s1098_s8 = sand.u32 (!%p1036_p8), 1, %s947_s19  }
  0x2a   : > { %s701_s10 = sshll.u32 (!%p1036_p8), %s1098_s8, 4  ;;  %s237_s16 = scalar_lea.sflag (!%p1036_p8), [#allocation3], %s1098_s8 }
  0x2b   : > { %s240_s28 = scalar_lea.vmem (!%p1036_p8), [#allocation2], %s701_s10 }
  0x2c   : > { %930 = dma.done.wait (%p1023_p4), %s237_s16, 256  }
  0x2d   : > { %932 = vsyncadd (%p1023_p4), %s237_s16, 4294967040 }
  0x2e   : > { %934 = dma.done.wait (%p43_p1), [#allocation6], 9216  }
  0x2f   : > { %936 = vsyncadd (%p43_p1), [#allocation6], 4294958080  ;;  %v312_v0 = vld [vmem:[#allocation5 + $0x78] sm:$0xff]  ;;  %v311_v1 = vld [vmem:[#allocation5 + $0x70] sm:$0xff]  ;;  %v280_v2 = vlaneseq  ;;  %vm313_vm2 = vcmask 523264   ;;  %s721_s12 = sshll.u32 %s1014_s22, 4 }
  0x30   : > { %328 = vmatpush.msra.mxu2 %v312_v0  ;;  %v303_v3 = vld [vmem:[#allocation5 + $0x38] sm:$0xff]  ;;  %v310_v4 = vld [vmem:[#allocation5 + $0x68] sm:$0xff]  ;;  %v302_v5 = vld [vmem:[#allocation5 + $0x30] sm:$0xff]  ;;  %s596_s27 = scalar_lea.hbm %s1207_s5, %s721_s12  ;;  %s277_s30 = scalar_lea.vmem [#allocation8], %s701_s10 }
  0x31   : > { %357 = vmatpush.msra.mxu1 %v303_v3  ;;  %v301_v6 = vld [vmem:[#allocation5 + $0x28] sm:$0xff]  ;;  %v309_v7 = vld [vmem:[#allocation5 + $0x60] sm:$0xff]  ;;  %v1112_v8 = vshrl.u32 %v280_v2, 7  ;;  %v308_v10 = vld [vmem:[#allocation5 + $0x58] sm:$0xff]  ;;  %s597_s6 = sshll.u32 %s277_s30, 4  ;;  %s599_s7 = sshll.u32 %s596_s27, 4  ;;  %s598_s6 = int_to_ptr.vmem [resolvable:$true] %s597_s6  ;;  %s600_s7 = int_to_ptr.hbm [resolvable:$true] %s599_s7 }
  0x32   : > { %329 = vmatpush.msra.mxu2 %v311_v1  ;;  %v300_v9 = vld [vmem:[#allocation5 + $0x20] sm:$0xff]  ;;  %v1116_v12 = vld [vmem:[%s240_s28 + $0x8] sm:$0xff]  ;;  %v307_v16 = vld [vmem:[#allocation5 + $0x50] sm:$0xff]  ;;  %s585_s22 = scalar_lea.sflag [#allocation4], %s1098_s8  ;;  %s899_s26 = sshra.s32 %s600_s7, 4  ;;  %s900_s26 = int_to_ptr.hbm [resolvable:$true] %s899_s26 }
  0x33   : > { %358 = vmatpush.msra.mxu1 %v302_v5  ;;  %v1114_v11 = vld [vmem:[%s240_s28] sm:$0xff]  ;;  %v299_v13 = vld [vmem:[#allocation5 + $0x18] sm:$0xff]  ;;  %v286_v15 = vrot.slane %v1116_v12, 7  ;;  %vm287_vm0 = vcmp.lt.s32.totalorder %v1112_v8, 1  ;;  %v306_v20 = vld [vmem:[#allocation5 + $0x48] sm:$0xff]  ;;  %vm283_vm1 = vcmp.eq.s32.totalorder %v1112_v8, 0  ;;  %p906_p11 = scmp.lt.s32.totalorder %s900_s26, %s1207_s5 }
  0x34   : > { %330 = vmatpush.msra.mxu2 %v310_v4  ;;  %v285_v14 = vrot.slane %v1114_v11, 7  ;;  %v475_v17 = vld [vmem:[#allocation7 + $0xf8] sm:$0xff]  ;;  %v298_v18 = vld [vmem:[#allocation5 + $0x10] sm:$0xff]  ;;  %v297_v21 = vld [vmem:[#allocation5 + $0x8] sm:$0xff]  ;;  %v374_v35 = vrot.slane %v1114_v11, 1  ;;  %v375_v36 = vrot.slane %v1116_v12, 1 }
  0x35   : > { %359 = vmatpush.msra.mxu1 %v301_v6  ;;  %v474_v19 = vld [vmem:[#allocation7 + $0xf0] sm:$0xff]  ;;  %476 = vmatpush.msra.mxu3 %v475_v17  ;;  %v473_v23 = vld [vmem:[#allocation7 + $0xe8] sm:$0xff]  ;;  %v305_v24 = vld [vmem:[#allocation5 + $0x40] sm:$0xff]  ;;  %vm376_vm3 = vcmp.lt.s32.totalorder %v1112_v8, 7  ;;  %v1140_v40 = vadd.s32 8, %v1112_v8  ;;  %s901_s16 = scalar_lea.hbm %s900_s26, 16 }
  0x36   : > { %331 = vmatpush.msra.mxu2 %v309_v7  ;;  %v289_v22 = vsel %vm287_vm0, %v286_v15, %v285_v14  ;;  %v296_v25 = vld [vmem:[#allocation5] sm:$0xff]  ;;  %v393_v26 = vld [vmem:[#allocation5 + $0xb8] sm:$0xff]  ;;  %v392_v29 = vld [vmem:[#allocation5 + $0xb0] sm:$0xff]  ;;  %v288_v33 = vsel %vm287_vm0, %v285_v14, %v286_v15  ;;  %v377_v39 = vsel %vm376_vm3, %v374_v35, %v375_v36  ;;  %v378_v41 = vsel %vm376_vm3, %v375_v36, %v374_v35  ;;  %p902_p1 = scmp.ne.s32.totalorder %s900_s26, %s901_s16  ;;  %s905_s24 = scalar_lea.hbm %s1207_s5, 32 }
  0x37   : > { %360 = vmatpush.msra.mxu1 %v300_v9  ;;  %477 = vmatpush.msra.mxu3 %v474_v19  ;;  %v294_v27 = vsel %vm283_vm1, 0.0, %v289_v22  ;;  %v472_v28 = vld [vmem:[#allocation7 + $0xe0] sm:$0xff]  ;;  %v391_v30 = vld [vmem:[#allocation5 + $0xa8] sm:$0xff]  ;;  %v389_v32 = vld [vmem:[#allocation5 + $0x98] sm:$0xff]  ;;  %vm373_vm4 = vcmp.eq.s32.totalorder %v1140_v40, 15  ;;  %p907_p2 = scmp.lt.s32.totalorder %s905_s24, %s901_s16 }
  0x38   : > { %332 = vmatpush.msra.mxu2 %v308_v10  ;;  %v390_v31 = vld [vmem:[#allocation5 + $0xa0] sm:$0xff]  ;;  %v388_v34 = vld [vmem:[#allocation5 + $0x90] sm:$0xff]  ;;  %v387_v37 = vld [vmem:[#allocation5 + $0x88] sm:$0xff]  ;;  %v384_v42 = vsel %vm373_vm4, 0.0, %v378_v41  ;;  %p903_p4 = pnand %p902_p1, %p1065_p3 }
  0x39   : > { %361 = vmatpush.msra.mxu1 %v299_v13  ;;  %478 = vmatpush.msra.mxu3 %v473_v23  ;;  %v386_v38 = vld [vmem:[#allocation5 + $0x80] sm:$0xff]  ;;  %v471_v43 = vld [vmem:[#allocation7 + $0xd8] sm:$0xff]  ;;  %v470_v44 = vld [vmem:[#allocation7 + $0xd0] sm:$0xff]  ;;  %p908_p9 = por %p907_p2, %p906_p11 }
  0x3a   : > { %333 = vmatpush.msra.mxu2 %v307_v16  ;;  %v458_v45 = vld [vmem:[#allocation7 + $0x78] sm:$0xff]  ;;  %v469_v47 = vld [vmem:[#allocation7 + $0xc8] sm:$0xff]  ;;  %v457_v48 = vld [vmem:[#allocation7 + $0x70] sm:$0xff]  ;;  %p904_p8 = pneg %p903_p4 }
  0x3b   : > { %362 = vmatpush.msra.mxu1 %v298_v18  ;;  %479 = vmatpush.msra.mxu3 %v472_v28  ;;  %v544_v46 = vld [vmem:[#allocation7 + $0x178] sm:$0xff]  ;;  %v543_v49 = vld [vmem:[#allocation7 + $0x170] sm:$0xff]  ;;  %v468_v50 = vld [vmem:[#allocation7 + $0xc0] sm:$0xff] }
  0x3c   : > { %334 = vmatpush.msra.mxu2 %v306_v20  ;;  %499 = vmatpush.msra.mxu0 %v458_v45  ;;  %v456_v51 = vld [vmem:[#allocation7 + $0x68] sm:$0xff]  ;;  %v467_v53 = vld [vmem:[#allocation7 + $0xb8] sm:$0xff]  ;;  %v455_v54 = vld [vmem:[#allocation7 + $0x60] sm:$0xff]  ;;  %p909_p10 = pnand %p908_p9, %p904_p8 }
  0x3d   : > { %363 = vmatpush.msra.mxu1 %v297_v21  ;;  %480 = vmatpush.msra.mxu3 %v471_v43  ;;  %v542_v52 = vld [vmem:[#allocation7 + $0x168] sm:$0xff]  ;;  %v541_v55 = vld [vmem:[#allocation7 + $0x160] sm:$0xff]  ;;  %v466_v56 = vld [vmem:[#allocation7 + $0xb0] sm:$0xff] }
  0x3e   : > { %335 = vmatpush.msra.mxu2 %v305_v24  ;;  %500 = vmatpush.msra.mxu0 %v457_v48  ;;  %v454_v57 = vld [vmem:[#allocation7 + $0x58] sm:$0xff]  ;;  %v465_v59 = vld [vmem:[#allocation7 + $0xa8] sm:$0xff]  ;;  %v453_v60 = vld [vmem:[#allocation7 + $0x50] sm:$0xff] }
  0x3f   : > { %705 = vmatmul.msk.f32.vlgmr.msra.gmra.mxu2 %vm313_vm2, %v1114_v11  ;;  %364 = vmatpush.msra.mxu1 %v296_v25  ;;  %v540_v58 = vld [vmem:[#allocation7 + $0x158] sm:$0xff]  ;;  %v539_v61 = vld [vmem:[#allocation7 + $0x150] sm:$0xff]  ;;  %v464_v62 = vld [vmem:[#allocation7 + $0xa0] sm:$0xff] }
  0x40   : > { %408 = vmatpush.msrb.mxu2 %v393_v26  ;;  %707 = vmatmul.msk.f32.vlgmr.msra.gmra.mxu1 %vm313_vm2, %v294_v27  ;;  %v452_v63 = vld [vmem:[#allocation7 + $0x48] sm:$0xff]  ;;  %v463_v1 = vld [vmem:[#allocation7 + $0x98] sm:$0xff]  ;;  %v451_v2 = vld [vmem:[#allocation7 + $0x40] sm:$0xff] }
  0x41   : > { %545 = vmatpush.msrb.mxu1 %v544_v46  ;;  %481 = vmatpush.msra.mxu3 %v470_v44  ;;  %v538_v0 = vld [vmem:[#allocation7 + $0x148] sm:$0xff]  ;;  %v537_v3 = vld [vmem:[#allocation7 + $0x140] sm:$0xff]  ;;  %v462_v4 = vld [vmem:[#allocation7 + $0x90] sm:$0xff] }
  0x42   : > { %409 = vmatpush.msrb.mxu2 %v392_v29  ;;  %501 = vmatpush.msra.mxu0 %v456_v51  ;;  %v450_v5 = vld [vmem:[#allocation7 + $0x38] sm:$0xff]  ;;  %v461_v7 = vld [vmem:[#allocation7 + $0x88] sm:$0xff]  ;;  %v449_v9 = vld [vmem:[#allocation7 + $0x30] sm:$0xff] }
  0x43   : > { %546 = vmatpush.msrb.mxu1 %v543_v49  ;;  %482 = vmatpush.msra.mxu3 %v469_v47  ;;  %v536_v6 = vld [vmem:[#allocation7 + $0x138] sm:$0xff]  ;;  %v535_v10 = vld [vmem:[#allocation7 + $0x130] sm:$0xff]  ;;  %v460_v11 = vld [vmem:[#allocation7 + $0x80] sm:$0xff] }
  0x44   : > { %410 = vmatpush.msrb.mxu2 %v391_v30  ;;  %502 = vmatpush.msra.mxu0 %v455_v54  ;;  %v534_v13 = vld [vmem:[#allocation7 + $0x128] sm:$0xff]  ;;  %v447_v14 = vld [vmem:[#allocation7 + $0x20] sm:$0xff]  ;;  %v446_v16 = vld [vmem:[#allocation7 + $0x18] sm:$0xff] }
  0x45   : > { %483 = vmatpush.msra.mxu3 %v468_v50  ;;  %547 = vmatpush.msrb.mxu1 %v542_v52  ;;  %v533_v15 = vld [vmem:[#allocation7 + $0x120] sm:$0xff]  ;;  %v532_v17 = vld [vmem:[#allocation7 + $0x118] sm:$0xff]  ;;  %v445_v18 = vld [vmem:[#allocation7 + $0x10] sm:$0xff] }
  0x46   : > { %411 = vmatpush.msrb.mxu2 %v390_v31  ;;  %503 = vmatpush.msra.mxu0 %v454_v57  ;;  %v531_v19 = vld [vmem:[#allocation7 + $0x110] sm:$0xff]  ;;  %v444_v20 = vld [vmem:[#allocation7 + $0x8] sm:$0xff]  ;;  %v443_v23 = vld [vmem:[#allocation7] sm:$0xff] }
  0x47   : > { %706 = vmatmul.msk.f32.gmra.mxu2 %vm313_vm2, %v1116_v12  ;;  %484 = vmatpush.msra.mxu3 %v467_v53  ;;  %v448_v12 = vld [vmem:[#allocation7 + $0x28] sm:$0xff]  ;;  %v529_v24 = vld [vmem:[#allocation7 + $0x100] sm:$0xff]  ;;  %vm711_vm7 = vmneg %vm283_vm1 }
  0x48   : > { %412 = vmatpush.msrb.mxu2 %v389_v32  ;;  %708 = vmatmul.msk.f32.gmra.mxu1 %vm313_vm2, %v288_v33  ;;  %v530_v21 = vld [vmem:[#allocation7 + $0x108] sm:$0xff]  ;;  %v793_v28 = vld [vmem:[%s1204_s2] ss:$0 sm:$0xff]  ;;  %vm713_vm8 = vmneg %vm373_vm4 }
  0x49   : > { %548 = vmatpush.msrb.mxu1 %v541_v55  ;;  %485 = vmatpush.msra.mxu3 %v466_v56  ;;  %v794_v54 = vld [vmem:[%s1206_s4] ss:$0 sm:$0xff] }
  0x4a   : > { %413 = vmatpush.msrb.mxu2 %v388_v34  ;;  %504 = vmatpush.msra.mxu0 %v453_v60 }
  0x4b   : > { %549 = vmatpush.msrb.mxu1 %v540_v58  ;;  %486 = vmatpush.msra.mxu3 %v465_v59 }
  0x4c   : > { %414 = vmatpush.msrb.mxu2 %v387_v37  ;;  %505 = vmatpush.msra.mxu0 %v452_v63 }
  0x4d   : > { %550 = vmatpush.msrb.mxu1 %v539_v61  ;;  %487 = vmatpush.msra.mxu3 %v464_v62 }
  0x4e   : > { %415 = vmatpush.msrb.mxu2 %v386_v38  ;;  %506 = vmatpush.msra.mxu0 %v451_v2 }
  0x4f   : > { %709 = vmatmul.msk.f32.vlgmr.msrb.gmra.mxu2 %vm313_vm2, %v377_v39  ;;  %551 = vmatpush.msrb.mxu1 %v538_v0 }
  0x50   : > { %488 = vmatpush.msra.mxu3 %v463_v1  ;;  %507 = vmatpush.msra.mxu0 %v450_v5 }
  0x51   : > { %552 = vmatpush.msrb.mxu1 %v537_v3 }
  0x52   : > { %489 = vmatpush.msra.mxu3 %v462_v4  ;;  %508 = vmatpush.msra.mxu0 %v449_v9 }
  0x53   : > { %553 = vmatpush.msrb.mxu1 %v536_v6 }
  0x54   : > { %490 = vmatpush.msra.mxu3 %v461_v7  ;;  %509 = vmatpush.msra.mxu0 %v448_v12 }
  0x55   : > { %554 = vmatpush.msrb.mxu1 %v535_v10 }
  0x56   : > { %491 = vmatpush.msra.mxu3 %v460_v11  ;;  %510 = vmatpush.msra.mxu0 %v447_v14 }
  0x57   : > { %710 = vmatmul.msk.f32.gmra.mxu2 %vm313_vm2, %v384_v42  ;;  %555 = vmatpush.msrb.mxu1 %v534_v13 }
  0x58   : > { %511 = vmatpush.msra.mxu0 %v446_v16 }
  0x59   : > { %556 = vmatpush.msrb.mxu1 %v533_v15 }
  0x5a   : > { %512 = vmatpush.msra.mxu0 %v445_v18 }
  0x5b   : > { %557 = vmatpush.msrb.mxu1 %v532_v17 }
  0x5c   : > { %513 = vmatpush.msra.mxu0 %v444_v20 }
  0x5d   : > { %558 = vmatpush.msrb.mxu1 %v531_v19 }
  0x5e   : > { %514 = vmatpush.msra.mxu0 %v443_v23 }
  0x5f   : > { %559 = vmatpush.msrb.mxu1 %v530_v21 }
  0x61   : > { %560 = vmatpush.msrb.mxu1 %v529_v24 }
  0xbd   : > { %v366_v26 = vpop.f32.mrf.mxu1 }
  0xc2   : > { %v337_v22 = vpop.f32.mrf.mxu2 }
  0xc3   : > { %v367_v27 = vadd.f32 %v366_v26, %v337_v22 }
  0xc5   : > { %v369_v32 = vpop.f32.mrf.mxu1 }
  0xca   : > { %v340_v25 = vpop.f32.mrf.mxu2 }
  0xcb   : > { %v370_v34 = vadd.f32 %v369_v32, %v340_v25 }
  0xd2   : > { %v417_v29 = vpop.f32.mrf.mxu2 }
  0xd3   : > { %v423_v30 = vadd.f32 %v417_v29, %v367_v27 }
  0xd5   : > { %v429_v31 = vadd.f32 %v793_v28, %v423_v30 }
  0xd7   : > { %vm431_vm5 = vcmp.gt.f32.partialorder %v429_v31, 0.0  ;;  %v433_v33 = vmul.f32 0.2, %v429_v31 }
  0xd9   : > { %v435_v35 = vsel %vm431_vm5, %v429_v31, %v433_v33 }
  0xda   : > { %v420_v36 = vpop.f32.mrf.mxu2  ;;  %492 = vmatmul.f32.vlgmr.msra.gmra.mxu3 %v435_v35  ;;  %v437_v42 = vrot.slane %v435_v35, 7  ;;  %v522_v43 = vrot.slane %v435_v35, 1 }
  0xdb   : > { %v424_v37 = vadd.f32 %v420_v36, %v370_v34 }
  0xdd   : > { %v430_v38 = vadd.f32 %v793_v28, %v424_v37 }
  0xdf   : > { %vm432_vm6 = vcmp.gt.f32.partialorder %v430_v38, 0.0  ;;  %v434_v39 = vmul.f32 0.2, %v430_v38 }
  0xe1   : > { %v436_v41 = vsel %vm432_vm6, %v430_v38, %v434_v39 }
  0xe2   : > { %v438_v44 = vrot.slane %v436_v41, 7  ;;  %495 = vmatmul.f32.gmra.mxu3 %v436_v41  ;;  %v523_v45 = vrot.slane %v436_v41, 1 }
  0xe4   : > { %v440_v46 = vsel %vm287_vm0, %v438_v44, %v437_v42  ;;  %v524_v47 = vsel %vm376_vm3, %v522_v43, %v523_v45  ;;  %v439_v48 = vsel %vm287_vm0, %v437_v42, %v438_v44  ;;  %v525_v49 = vsel %vm376_vm3, %v523_v45, %v522_v43 }
  0xe5   : > { %712 = vmatmul.msk.f32.vlgmr.msra.gmra.mxu0 %vm711_vm7, %v440_v46  ;;  %561 = vmatmul.f32.vlgmr.msrb.gmra.mxu1 %v524_v47 }
  0xed   : > { %518 = vmatmul.f32.gmra.mxu0 %v439_v48  ;;  %714 = vmatmul.msk.f32.gmra.mxu1 %vm713_vm8, %v525_v49 }
 0x15d   : > { %v493_v50 = vpop.f32.mrf.mxu3 }
 0x162   : > { %v516_v51 = vpop.f32.mrf.mxu0  ;;  %v562_v52 = vpop.f32.mrf.mxu1 }
 0x163   : > { %v517_v53 = vadd.f32 %v516_v51, %v493_v50 }
 0x165   : > { %v568_v55 = vadd.f32 %v562_v52, %v517_v53  ;;  %v496_v57 = vpop.f32.mrf.mxu3 }
 0x167   : > { %v574_v40 = vadd.f32 %v794_v54, %v568_v55 }
 0x169   : > { %vm576_vm9 = vcmp.gt.f32.partialorder %v574_v40, 0.0  ;;  %v578_v56 = vmul.f32 0.2, %v574_v40 }
 0x16a   : > { %v519_v58 = vpop.f32.mrf.mxu0  ;;  %v565_v60 = vpop.f32.mrf.mxu1 }
 0x16b   : > { %v580_v8 = vsel %vm576_vm9, %v574_v40, %v578_v56  ;;  %v520_v59 = vadd.f32 %v519_v58, %v496_v57 }
 0x16c   : > { %582 = vst [vmem:[%s277_s30] sm:$0xff] %v580_v8 }
 0x16d   : > { %v569_v61 = vadd.f32 %v565_v60, %v520_v59 }
 0x16f   : > { %v575_v62 = vadd.f32 %v794_v54, %v569_v61 }
 0x171   : > { %vm577_vm10 = vcmp.gt.f32.partialorder %v575_v62, 0.0  ;;  %v579_v63 = vmul.f32 0.2, %v575_v62 }
 0x173   : > { %v581_v0 = vsel %vm577_vm10, %v575_v62, %v579_v63 }
 0x174   : > { %583 = vst [vmem:[%s277_s30 + $0x8] sm:$0xff] %v581_v0 }
 0x175   : > { %912 = shalt.err (!%p909_p10)
}
 0x176   : > { %s961_s8 = smov 128   ;;  %s962_s9 = smov 8  }
 0x177   : > { %732 = dma.vmem_to_hbm [thread:$0]  (%p1065_p3), %s598_s6, 256, %s600_s7, %s585_s22, %s961_s8, %s961_s8, %s962_s9  }
 0x178 PF: > { %s614_s12 = sand.u32 1, %s943_s18   ;;  %p1215_p12 = scmp.ge.s32.totalorder %s955_s21, 2 }
 0x179   : > { %s615_s13 = scalar_lea.sflag [#allocation4], %s614_s12 }
 0x17a   : > { %p746_p13 = pnand %p1215_p12, %p1028_p6 }
 0x17c   : > { %p747_p0 = pneg %p746_p13 }
 0x17e   : > { %938 = dma.done.wait (%p747_p0), %s615_s13, 256  }
 0x17f   : > { %940 = vsyncadd (%p747_p0), %s615_s13, 4294967040  ;;  %p19_p5 = scmp.ge.s32.totalorder %s1055_s14, 4   ;;  %s1216_s18 = smov %s947_s19 }
 0x180   : > { %s1217_s19 = smov %s951_s20  ;;  %s1218_s20 = smov %s1071_s23 }
 0x181   : > { %s1219_s21 = smov %s1055_s14  ;;  %21 = sbr.rel (!%p19_p5) target bundleno = 6 (0x6), region = 97 }
 0x186   :  { %621 = vsyncpa [#allocation3], 1 }
 0x187   :  { %623 = vsyncpa [#allocation3 + $0x1], 1 }
 0x188   :  { %624 = vsyncpa [#allocation6], 1 }
 0x189   :  { %625 = vsyncpa [#allocation4], 1 }
 0x18a   :  { %627 = vsyncpa [#allocation4 + $0x1], 1 }

</bundles_post_ra>
